<compile_context>
chip_gen: v6e
topology: v6e:2x2x1
jax: 0.10.0
libtpu: 0.0.40
codegen_flags: <defaults>
</compile_context>

<pallas_src>
import functools
import math

import jax
import jax.numpy as jnp
from jax.experimental import pallas as pl
from jax.experimental.pallas import tpu as pltpu


def _round_up(x, m):
    return ((x + m - 1) // m) * m


# ----------------------------------------------------------------------------
# Kernel 1: fused FeatureResizer MLP + L2 norm (row-tiled over all text rows)
# ----------------------------------------------------------------------------

def _resizer_norm_kernel(x_ref, w1_ref, b1_ref, w2_ref, b2_ref, w3_ref, b3_ref,
                         o_ref):
    # bf16 MXU operands, f32 accumulation; norm math in f32.
    x = x_ref[...].astype(jnp.bfloat16)
    h = jnp.maximum(
        jnp.dot(x, w1_ref[...], preferred_element_type=jnp.float32) + b1_ref[...], 0.0)
    h = jnp.maximum(
        jnp.dot(h.astype(jnp.bfloat16), w2_ref[...],
                preferred_element_type=jnp.float32) + b2_ref[...], 0.0)
    y = (jnp.dot(h.astype(jnp.bfloat16), w3_ref[...],
                 preferred_element_type=jnp.float32) + b3_ref[...])
    inv = jax.lax.rsqrt(jnp.sum(y * y, axis=-1, keepdims=True) + 1e-12)
    o_ref[...] = (y * inv).astype(o_ref.dtype)


def resizer_l2norm(x2d, rp, row_tile=256):
    M, Dtxt = x2d.shape
    C = rp["w3"].shape[1]

    TM = min(row_tile, _round_up(M, 8))
    Mp = _round_up(M, TM)
    if Mp != M:
        x2d = jnp.pad(x2d, ((0, Mp - M), (0, 0)))

    w1 = rp["w1"].astype(jnp.bfloat16)
    w2 = rp["w2"].astype(jnp.bfloat16)
    w3 = rp["w3"].astype(jnp.bfloat16)

    def const_spec(a):
        nd = a.ndim
        return pl.BlockSpec(a.shape, lambda i, _nd=nd: (0,) * _nd)

    grid_spec = pltpu.PrefetchScalarGridSpec(
        num_scalar_prefetch=0,
        grid=(Mp // TM,),
        in_specs=[pl.BlockSpec((TM, Dtxt), lambda i: (i, 0)),
                  const_spec(w1), const_spec(rp["b1"]),
                  const_spec(w2), const_spec(rp["b2"]),
                  const_spec(w3), const_spec(rp["b3"])],
        out_specs=pl.BlockSpec((TM, C), lambda i: (i, 0)),
    )
    out = pl.pallas_call(
        _resizer_norm_kernel,
        out_shape=jax.ShapeDtypeStruct((Mp, C), jnp.float32),
        grid_spec=grid_spec,
        compiler_params=pltpu.CompilerParams(dimension_semantics=("parallel",)),
    )(x2d, w1, rp["b1"], w2, rp["b2"], w3, rp["b3"])
    return out[:M]


# ----------------------------------------------------------------------------
# Kernel 2: per-image sparse + dense fusion, grid=(B, HW tiles)
#           features held in (C, HW) orientation (lane-dense dense branch,
#           free NCHW output), sparse branch accumulated across HW tiles.
# ----------------------------------------------------------------------------

def _fusion_kernel(feat_ref, wp_ref, wpt_ref,
                   sfcw_img_ref, sfcw_word_ref, sfc_b_ref,
                   dcvw_img_ref, dcvw_lang_ref, dcv_b_ref,
                   sparse_ref, dense_ref, lang_acc, *, C, L):
    t = pl.program_id(1)

    feat = feat_ref[0].astype(jnp.float32)                       # (C, TH) raw SAM feats
    # channel L2-norm per spatial location (== feat / feat.norm(dim=0) in NCHW)
    inv = jax.lax.rsqrt(jnp.sum(feat * feat, axis=0, keepdims=True) + 1e-12)
    feat_nb = (feat * inv).astype(jnp.bfloat16)                  # (C, TH)

    wp_b = wp_ref[0].astype(jnp.bfloat16)                        # (L+1, C): [words ; sentence]
    wpt_b = wpt_ref[0].astype(jnp.bfloat16)                      # (C, L+1) (pre-transposed)
    word_b = wp_b[:L, :]                                         # (L, C)

    # ---- sparse-attention branch (un-normalised, as in the torch source) ----
    @pl.when(t == 0)
    def _():
        lang_acc[...] = jnp.zeros_like(lang_acc)

    attn = jnp.dot(word_b, feat_nb, preferred_element_type=jnp.float32)     # (L, TH)
    lang_acc[...] += jax.lax.dot_general(                                   # (L, C)
        attn.astype(jnp.bfloat16), feat_nb,
        (((1,), (1,)), ((), ())), preferred_element_type=jnp.float32)

    # ---- dense spatial-dynamic fusion branch (text dim on sublanes) ----
    scale = 1.0 / math.sqrt(C)
    s = jnp.dot(wp_b, feat_nb, preferred_element_type=jnp.float32) * scale  # (L+1, TH)
    s = s - jnp.max(s, axis=0, keepdims=True)
    p = jnp.exp(s)
    p = p / jnp.sum(p, axis=0, keepdims=True)                    # exact softmax (f32)
    lang2 = jnp.dot(wpt_b, p.astype(jnp.bfloat16),
                    preferred_element_type=jnp.float32)          # (C, TH)
    dense = (jnp.dot(dcvw_img_ref[...], feat_nb, preferred_element_type=jnp.float32)
             + jnp.dot(dcvw_lang_ref[...], lang2.astype(jnp.bfloat16),
                       preferred_element_type=jnp.float32)
             + dcv_b_ref[...])                                   # (C, TH), 1x1 conv
    dense_ref[0] = dense.astype(dense_ref.dtype)

    @pl.when(t == pl.num_programs(1) - 1)
    def _():
        lang_b = lang_acc[...].astype(jnp.bfloat16)
        sparse = (jnp.dot(lang_b, sfcw_img_ref[...], preferred_element_type=jnp.float32)
                  + jnp.dot(word_b, sfcw_word_ref[...], preferred_element_type=jnp.float32)
                  + sfc_b_ref[...])
        sparse_ref[0] = sparse.astype(sparse_ref.dtype)


def fusion_forward(params, feat_bc_hw, word_plus, word_plus_t, hw_tile=512):
    B, C, HW = feat_bc_hw.shape
    Lp1 = word_plus.shape[1]
    L = Lp1 - 1

    TH = hw_tile if (HW > hw_tile and HW % hw_tile == 0) else HW
    n_hw = HW // TH

    # Split / pre-transpose the fused-conv weights once in the wrapper so the
    # kernel uses standard (M,K)x(K,N) matmuls with zero in-kernel slicing.
    sfcw_img = params["sparse_fc_w"][:C, :].astype(jnp.bfloat16)     # (C, C)
    sfcw_word = params["sparse_fc_w"][C:, :].astype(jnp.bfloat16)    # (C, C)
    sfc_b = params["sparse_fc_b"]                                    # (1, C)
    dcvw_img = params["dense_conv_w"][:C, :].T.astype(jnp.bfloat16)  # (Cout, Cin)
    dcvw_lang = params["dense_conv_w"][C:, :].T.astype(jnp.bfloat16)
    dcv_b = params["dense_conv_b"].reshape(C, 1)                     # (C, 1)

    def const_spec(a):
        nd = a.ndim
        return pl.BlockSpec(a.shape, lambda b, t, _nd=nd: (0,) * _nd)

    grid_spec = pltpu.PrefetchScalarGridSpec(
        num_scalar_prefetch=0,
        grid=(B, n_hw),
        in_specs=[
            pl.BlockSpec((1, C, TH), lambda b, t: (b, 0, t)),
            pl.BlockSpec((1, Lp1, C), lambda b, t: (b, 0, 0)),
            pl.BlockSpec((1, C, Lp1), lambda b, t: (b, 0, 0)),
            const_spec(sfcw_img), const_spec(sfcw_word), const_spec(sfc_b),
            const_spec(dcvw_img), const_spec(dcvw_lang), const_spec(dcv_b),
        ],
        out_specs=[
            pl.BlockSpec((1, L, C), lambda b, t: (b, 0, 0)),      # written on last tile
            pl.BlockSpec((1, C, TH), lambda b, t: (b, 0, t)),
        ],
        scratch_shapes=[pltpu.VMEM((L, C), jnp.float32)],
    )
    return pl.pallas_call(
        functools.partial(_fusion_kernel, C=C, L=L),
        out_shape=(jax.ShapeDtypeStruct((B, L, C), jnp.float32),
                   jax.ShapeDtypeStruct((B, C, HW), jnp.float32)),
        grid_spec=grid_spec,
        compiler_params=pltpu.CompilerParams(
            dimension_semantics=("parallel", "arbitrary"),
            # Raised scoped-VMEM limit so whole-image tiles stay resident at SAM
            # scale on v5e/v6e; the HW tiling above keeps v7x (64 MiB) within budget.
            vmem_limit_bytes=64 * 1024 * 1024),
    )(feat_bc_hw, word_plus, word_plus_t,
      sfcw_img, sfcw_word, sfc_b, dcvw_img, dcvw_lang, dcv_b)


# ----------------------------------------------------------------------------
# Kernel 3: fused QueryInteractionModule, whole batch in one invocation
#           (block-diagonal masked self-attention over B*T packed rows)
# ----------------------------------------------------------------------------

def _qim_kernel(x_ref, mask_ref,
                wq_ref, wk_ref, wv_ref, bq_ref, bk_ref, bv_ref,
                outw_ref, outb_ref,
                l1w_ref, l1b_ref, l2w_ref, l2b_ref,
                f1w_ref, f1b_ref, f2w_ref, f2b_ref,
                n1g_ref, n1b_ref, n2g_ref, n2b_ref, nfg_ref, nfb_ref,
                o_ref, *, num_heads, eps=1e-5):
    x = x_ref[...].astype(jnp.float32)                 # (B*T, D)
    x_bf = x.astype(jnp.bfloat16)
    mask = mask_ref[...]                               # (B*T, B*T) additive, 0 / -1e30
    D = x.shape[-1]
    dh = D // num_heads
    scale = 1.0 / math.sqrt(dh)

    def ln(v, g_ref, b_ref):
        mu = jnp.mean(v, axis=-1, keepdims=True)
        var = jnp.mean((v - mu) ** 2, axis=-1, keepdims=True)
        return (v - mu) * jax.lax.rsqrt(var + eps) * g_ref[...] + b_ref[...]

    def softmax_rows(s):                               # exact softmax (f32)
        s = s - jnp.max(s, axis=-1, keepdims=True)
        p = jnp.exp(s)
        return p / jnp.sum(p, axis=-1, keepdims=True)

    # ---- multi-head self-attention: per-head weights, shared activations ----
    heads = []
    for h in range(num_heads):                         # unrolled; dropout=0 (eval)
        q = jnp.dot(x_bf, wq_ref[h], preferred_element_type=jnp.float32) + bq_ref[h]
        k = jnp.dot(x_bf, wk_ref[h], preferred_element_type=jnp.float32) + bk_ref[h]
        v = jnp.dot(x_bf, wv_ref[h], preferred_element_type=jnp.float32) + bv_ref[h]
        s = jax.lax.dot_general(
            q.astype(jnp.bfloat16), k.astype(jnp.bfloat16),
            (((1,), (1,)), ((), ())), preferred_element_type=jnp.float32) * scale
        p = softmax_rows(s + mask)                     # block-diagonal -> per-image attn
        heads.append(jnp.dot(p.astype(jnp.bfloat16), v.astype(jnp.bfloat16),
                             preferred_element_type=jnp.float32))
    o_full = jnp.concatenate(heads, axis=-1)           # (B*T, D)
    tgt2 = (jnp.dot(o_full.astype(jnp.bfloat16), outw_ref[...],
                    preferred_element_type=jnp.float32) + outb_ref[...])

    tgt = ln(x + tgt2, n1g_ref, n1b_ref)
    h1 = jnp.maximum(jnp.dot(tgt.astype(jnp.bfloat16), l1w_ref[...],
                             preferred_element_type=jnp.float32) + l1b_ref[...], 0.0)
    ff = (jnp.dot(h1.astype(jnp.bfloat16), l2w_ref[...],
                  preferred_element_type=jnp.float32) + l2b_ref[...])
    tgt = ln(tgt + ff, n2g_ref, n2b_ref)
    h2 = jnp.maximum(jnp.dot(tgt.astype(jnp.bfloat16), f1w_ref[...],
                             preferred_element_type=jnp.float32) + f1b_ref[...], 0.0)
    qf2 = (jnp.dot(h2.astype(jnp.bfloat16), f2w_ref[...],
                   preferred_element_type=jnp.float32) + f2b_ref[...])
    qf = ln(x + qf2, nfg_ref, nfb_ref)
    o_ref[...] = qf.astype(o_ref.dtype)


def qim_forward(qp, tokens):
    # tokens: (B, T, C) == B copies of torch's (T, 1, C) with batch-of-1 per image
    B, T, C = tokens.shape
    H = qp["num_heads"]
    dh = C // H

    x2 = tokens.reshape(B * T, C)
    # block-diagonal additive mask: 0 within an image, -1e30 across images
    img_id = jnp.arange(B * T) // T
    neg_mask = jnp.where(img_id[:, None] == img_id[None, :], 0.0, -1e30
                         ).astype(jnp.float32)

    in_w = qp["in_proj_w"]                              # (C, 3C)
    in_b = qp["in_proj_b"]                              # (1, 3C)

    def head_w(w_slice):                                # (C, C) -> (H, C, dh), bf16
        return w_slice.reshape(C, H, dh).transpose(1, 0, 2).astype(jnp.bfloat16)

    def head_b(b_slice):                                # (C,) -> (H, 1, dh), f32
        return b_slice.reshape(H, 1, dh)

    wq, wk, wv = (head_w(in_w[:, :C]), head_w(in_w[:, C:2 * C]), head_w(in_w[:, 2 * C:]))
    bq, bk, bv = (head_b(in_b[0, :C]), head_b(in_b[0, C:2 * C]), head_b(in_b[0, 2 * C:]))

    bf = lambda a: a.astype(jnp.bfloat16)
    args = (x2, neg_mask, wq, wk, wv, bq, bk, bv,
            bf(qp["out_proj_w"]), qp["out_proj_b"],
            bf(qp["lin1_w"]), qp["lin1_b"], bf(qp["lin2_w"]), qp["lin2_b"],
            bf(qp["linf1_w"]), qp["linf1_b"], bf(qp["linf2_w"]), qp["linf2_b"],
            qp["norm1_g"], qp["norm1_b"], qp["norm2_g"], qp["norm2_b"],
            qp["normf_g"], qp["normf_b"])

    out = pl.pallas_call(
        functools.partial(_qim_kernel, num_heads=H),
        out_shape=jax.ShapeDtypeStruct((B * T, C), jnp.float32),
    )(*args)
    return out.reshape(B, T, C)


# ----------------------------------------------------------------------------
# Model forward (batched; no per-image Python loops of kernels)
# ----------------------------------------------------------------------------

def model_forward(params, img_features, encoder_output, origin_track_tokens,
                  object_tokens, use_track_tokens=True):
    """
    img_features        : (B, C, H, W)  -- stand-in for SamPredictor.features
    encoder_output      : (B, L, Dtxt)  -- stand-in for text_encoder(...).last_hidden_state
    origin_track_tokens : (B, T, 1, C)
    object_tokens       : (B, T, 1, C)  -- stand-in for SAM mask_decoder object tokens
    """
    B, C, H, W = img_features.shape
    _, L, Dtxt = encoder_output.shape
    HW = H * W

    # TODO(synk): SAM image encoder / SamPredictor.set_image has no Pallas
    # equivalent; `img_features` stands in for predictor.features.
    # Keep the native NCHW channel-major layout: (B, C, HW) with NO transpose.
    feat_bc_hw = img_features.reshape(B, C, HW)

    # TODO(synk): HF tokenizer + roberta/t5 text encoder are not translatable;
    # `encoder_output` stands in for their output.
    text_sentence = jnp.mean(encoder_output, axis=1)                       # (B, Dtxt)
    rows = jnp.concatenate(
        [text_sentence, encoder_output.reshape(B * L, Dtxt)], axis=0)      # (B+B*L, Dtxt)
    out_rows = resizer_l2norm(rows, params["resizer"])                     # (B+B*L, C)
    after_sent = out_rows[:B]                                              # (B, C)
    after_word = out_rows[B:].reshape(B, L, C)                             # (B, L, C)

    # [word tokens ; sentence token] packed once (+ its transpose, tiny, one XLA op)
    word_plus = jnp.concatenate([after_word, after_sent[:, None, :]], axis=1)  # (B,L+1,C)
    word_plus_t = word_plus.transpose(0, 2, 1)                                 # (B,C,L+1)

    sparse_b, dense_flat = fusion_forward(params, feat_bc_hw, word_plus,
                                          word_plus_t)                     # (B,L,C),(B,C,HW)
    dense_nchw = dense_flat.reshape(B, C, H, W)                            # free reshape

    # TODO(synk): SAM mask_decoder + postprocess_masks are not translatable;
    # `object_tokens` stands in for the decoder's object tokens, no masks here.
    tokens = (object_tokens + origin_track_tokens).reshape(B, -1, C)       # (B, T, C)
    track_b = qim_forward(params["qim"], tokens)                           # (B, T, C)

    # Batched outputs (equivalent per-item to the torch lists; slice at the
    # consumer if the list API is required).
    if use_track_tokens:
        return dense_nchw, sparse_b, track_b
    return dense_nchw, sparse_b


# ----------------------------------------------------------------------------
# Deterministic parameter init
# ----------------------------------------------------------------------------

def init_params(key, C, Dtxt, qim_hidden, num_heads):
    ks = iter(jax.random.split(key, 40))
    W = lambda shape: jax.random.normal(next(ks), shape, jnp.float32) / math.sqrt(shape[0])
    Bz = lambda n: jnp.zeros((1, n), jnp.float32)
    hid = Dtxt // 2

    resizer = dict(
        w1=W((Dtxt, hid)), b1=Bz(hid),
        w2=W((hid, hid)), b2=Bz(hid),
        w3=W((hid, C)), b3=Bz(C),
    )
    qim = dict(
        num_heads=num_heads,
        # NOTE: torch nn.MultiheadAttention stores in_proj_weight as (3D, D)
        # applied as x @ W.T; a real checkpoint load must transpose into this
        # (D, 3D) layout.
        in_proj_w=W((C, 3 * C)), in_proj_b=Bz(3 * C),
        out_proj_w=W((C, C)), out_proj_b=Bz(C),
        lin1_w=W((C, qim_hidden)), lin1_b=Bz(qim_hidden),
        lin2_w=W((qim_hidden, C)), lin2_b=Bz(C),
        linf1_w=W((C, qim_hidden)), linf1_b=Bz(qim_hidden),
        linf2_w=W((qim_hidden, C)), linf2_b=Bz(C),
        norm1_g=jnp.ones((1, C), jnp.float32), norm1_b=Bz(C),
        norm2_g=jnp.ones((1, C), jnp.float32), norm2_b=Bz(C),
        normf_g=jnp.ones((1, C), jnp.float32), normf_b=Bz(C),
    )
    return dict(
        resizer=resizer,
        sparse_fc_w=W((2 * C, C)), sparse_fc_b=Bz(C),
        dense_conv_w=W((2 * C, C)), dense_conv_b=Bz(C),   # 1x1 conv as (Cin, Cout)
        qim=qim,
    )


# ----------------------------------------------------------------------------

if __name__ == "__main__":
    # Small shapes (stand-ins for: 256-dim SAM feats, 768-dim roberta, 8 heads, ...)
    B, C, H, W = 2, 32, 8, 8        # images / SAM feature channels / spatial
    Dtxt, L = 64, 8                 # text-encoder hidden dim / tokens
    T, num_heads, qim_hidden = 4, 4, 64

    key = jax.random.PRNGKey(0)
    k1, k2, k3, k4, kp = jax.random.split(key, 5)

    img_features = jax.random.normal(k1, (B, C, H, W), jnp.float32)
    encoder_output = jax.random.normal(k2, (B, L, Dtxt), jnp.float32)
    origin_track_tokens = jax.random.normal(k3, (B, T, 1, C), jnp.float32)
    object_tokens = jax.random.normal(k4, (B, T, 1, C), jnp.float32)

    params = init_params(kp, C, Dtxt, qim_hidden, num_heads)

    dense_b, sparse_b, track_b = model_forward(
        params, img_features, encoder_output, origin_track_tokens,
        object_tokens, use_track_tokens=True)

    jax.block_until_ready((dense_b, sparse_b, track_b))

    assert dense_b.shape == (B, C, H, W)
    assert sparse_b.shape == (B, L, C)
    assert track_b.shape == (B, T, C)
    print("KERNEL_OK")
</pallas_src>

<mosaic_0001>
module attributes {stable_mosaic.version = 11 : i64} {
  func.func @_resizer_norm_kernel(%arg0: i32, %arg1: memref<24x64xf32, #tpu.memory_space<vmem>>, %arg2: memref<64x32xbf16, #tpu.memory_space<vmem>>, %arg3: memref<1x32xf32, #tpu.memory_space<vmem>>, %arg4: memref<32x32xbf16, #tpu.memory_space<vmem>>, %arg5: memref<1x32xf32, #tpu.memory_space<vmem>>, %arg6: memref<32x32xbf16, #tpu.memory_space<vmem>>, %arg7: memref<1x32xf32, #tpu.memory_space<vmem>>, %arg8: memref<24x32xf32, #tpu.memory_space<vmem>>) attributes {dimension_semantics = [#tpu.dimension_semantics<parallel>], iteration_bounds = array<i64: 1>, scalar_prefetch = 0 : i64, scratch_operands = 0 : i64, tpu.core_type = #tpu.core_type<tc>, window_params = [{transform_indices = @transform_0, window_bounds = array<i64: 24, 64>}, {pipeline_mode = #tpu.pipeline_mode<synchronous>, transform_indices = @transform_1, window_bounds = array<i64: 64, 32>}, {pipeline_mode = #tpu.pipeline_mode<synchronous>, transform_indices = @transform_2, window_bounds = array<i64: 1, 32>}, {pipeline_mode = #tpu.pipeline_mode<synchronous>, transform_indices = @transform_3, window_bounds = array<i64: 32, 32>}, {pipeline_mode = #tpu.pipeline_mode<synchronous>, transform_indices = @transform_4, window_bounds = array<i64: 1, 32>}, {pipeline_mode = #tpu.pipeline_mode<synchronous>, transform_indices = @transform_5, window_bounds = array<i64: 32, 32>}, {pipeline_mode = #tpu.pipeline_mode<synchronous>, transform_indices = @transform_6, window_bounds = array<i64: 1, 32>}, {transform_indices = @transform_7, window_bounds = array<i64: 24, 32>}]} {
    %c0 = arith.constant 0 : index
    %c0_0 = arith.constant 0 : index
    %0 = vector.load %arg1[%c0, %c0_0] : memref<24x64xf32, #tpu.memory_space<vmem>>, vector<24x64xf32>
    %1 = arith.truncf %0 : vector<24x64xf32> to vector<24x64xbf16>
    %c0_1 = arith.constant 0 : index
    %c0_2 = arith.constant 0 : index
    %2 = vector.load %arg2[%c0_1, %c0_2] : memref<64x32xbf16, #tpu.memory_space<vmem>>, vector<64x32xbf16>
    %cst = arith.constant dense<0.000000e+00> : vector<24x32xf32>
    %3 = tpu.matmul %1, %2, %cst {dimension_numbers = #tpu.dot_dimension_numbers<[1], [0], [0], [1], [0, 0, 1, 1], [], []>} : vector<24x64xbf16>, vector<64x32xbf16>, vector<24x32xf32> -> vector<24x32xf32>
    %c0_3 = arith.constant 0 : index
    %c0_4 = arith.constant 0 : index
    %4 = vector.load %arg3[%c0_3, %c0_4] : memref<1x32xf32, #tpu.memory_space<vmem>>, vector<1x32xf32>
    %5 = vector.broadcast %4 : vector<1x32xf32> to vector<24x32xf32>
    %6 = arith.addf %3, %5 : vector<24x32xf32>
    %cst_5 = arith.constant 0.000000e+00 : f32
    %7 = vector.broadcast %cst_5 : f32 to vector<24x32xf32>
    %8 = arith.maximumf %6, %7 : vector<24x32xf32>
    %9 = arith.truncf %8 : vector<24x32xf32> to vector<24x32xbf16>
    %c0_6 = arith.constant 0 : index
    %c0_7 = arith.constant 0 : index
    %10 = vector.load %arg4[%c0_6, %c0_7] : memref<32x32xbf16, #tpu.memory_space<vmem>>, vector<32x32xbf16>
    %cst_8 = arith.constant dense<0.000000e+00> : vector<24x32xf32>
    %11 = tpu.matmul %9, %10, %cst_8 {dimension_numbers = #tpu.dot_dimension_numbers<[1], [0], [0], [1], [0, 0, 1, 1], [], []>} : vector<24x32xbf16>, vector<32x32xbf16>, vector<24x32xf32> -> vector<24x32xf32>
    %c0_9 = arith.constant 0 : index
    %c0_10 = arith.constant 0 : index
    %12 = vector.load %arg5[%c0_9, %c0_10] : memref<1x32xf32, #tpu.memory_space<vmem>>, vector<1x32xf32>
    %13 = vector.broadcast %12 : vector<1x32xf32> to vector<24x32xf32>
    %14 = arith.addf %11, %13 : vector<24x32xf32>
    %cst_11 = arith.constant 0.000000e+00 : f32
    %15 = vector.broadcast %cst_11 : f32 to vector<24x32xf32>
    %16 = arith.maximumf %14, %15 : vector<24x32xf32>
    %17 = arith.truncf %16 : vector<24x32xf32> to vector<24x32xbf16>
    %c0_12 = arith.constant 0 : index
    %c0_13 = arith.constant 0 : index
    %18 = vector.load %arg6[%c0_12, %c0_13] : memref<32x32xbf16, #tpu.memory_space<vmem>>, vector<32x32xbf16>
    %cst_14 = arith.constant dense<0.000000e+00> : vector<24x32xf32>
    %19 = tpu.matmul %17, %18, %cst_14 {dimension_numbers = #tpu.dot_dimension_numbers<[1], [0], [0], [1], [0, 0, 1, 1], [], []>} : vector<24x32xbf16>, vector<32x32xbf16>, vector<24x32xf32> -> vector<24x32xf32>
    %c0_15 = arith.constant 0 : index
    %c0_16 = arith.constant 0 : index
    %20 = vector.load %arg7[%c0_15, %c0_16] : memref<1x32xf32, #tpu.memory_space<vmem>>, vector<1x32xf32>
    %21 = vector.broadcast %20 : vector<1x32xf32> to vector<24x32xf32>
    %22 = arith.addf %19, %21 : vector<24x32xf32>
    %23 = arith.mulf %22, %22 : vector<24x32xf32>
    %cst_17 = arith.constant dense<0.000000e+00> : vector<24xf32>
    %24 = vector.multi_reduction <add>, %23, %cst_17 [1] : vector<24x32xf32> to vector<24xf32>
    %25 = vector.shape_cast %24 : vector<24xf32> to vector<24x1xf32>
    %cst_18 = arith.constant 9.99999996E-13 : f32
    %26 = vector.broadcast %cst_18 : f32 to vector<24x1xf32>
    %27 = arith.addf %25, %26 : vector<24x1xf32>
    %28 = math.rsqrt %27 : vector<24x1xf32>
    %29 = vector.broadcast %28 : vector<24x1xf32> to vector<24x32xf32>
    %30 = arith.mulf %22, %29 : vector<24x32xf32>
    %c0_19 = arith.constant 0 : index
    %c0_20 = arith.constant 0 : index
    %31 = vector.load %arg8[%c0_19, %c0_20] : memref<24x32xf32, #tpu.memory_space<vmem>>, vector<24x32xf32>
    tpu.vector_store %arg8[%c0_19, %c0_20], %30 {strides = array<i32>} : memref<24x32xf32, #tpu.memory_space<vmem>>, vector<24x32xf32>,
    return
  }
  func.func @transform_0(%arg0: i32) -> (i32, i32) {
    %c0_i32 = arith.constant 0 : i32
    %c0_i32_0 = arith.constant 0 : i32
    return %arg0, %c0_i32 : i32, i32
  }
  func.func @transform_1(%arg0: i32) -> (i32, i32) {
    %c0_i32 = arith.constant 0 : i32
    %c0_i32_0 = arith.constant 0 : i32
    %c0_i32_1 = arith.constant 0 : i32
    return %c0_i32, %c0_i32_0 : i32, i32
  }
  func.func @transform_2(%arg0: i32) -> (i32, i32) {
    %c0_i32 = arith.constant 0 : i32
    %c0_i32_0 = arith.constant 0 : i32
    %c0_i32_1 = arith.constant 0 : i32
    return %c0_i32, %c0_i32_0 : i32, i32
  }
  func.func @transform_3(%arg0: i32) -> (i32, i32) {
    %c0_i32 = arith.constant 0 : i32
    %c0_i32_0 = arith.constant 0 : i32
    %c0_i32_1 = arith.constant 0 : i32
    return %c0_i32, %c0_i32_0 : i32, i32
  }
  func.func @transform_4(%arg0: i32) -> (i32, i32) {
    %c0_i32 = arith.constant 0 : i32
    %c0_i32_0 = arith.constant 0 : i32
    %c0_i32_1 = arith.constant 0 : i32
    return %c0_i32, %c0_i32_0 : i32, i32
  }
  func.func @transform_5(%arg0: i32) -> (i32, i32) {
    %c0_i32 = arith.constant 0 : i32
    %c0_i32_0 = arith.constant 0 : i32
    %c0_i32_1 = arith.constant 0 : i32
    return %c0_i32, %c0_i32_0 : i32, i32
  }
  func.func @transform_6(%arg0: i32) -> (i32, i32) {
    %c0_i32 = arith.constant 0 : i32
    %c0_i32_0 = arith.constant 0 : i32
    %c0_i32_1 = arith.constant 0 : i32
    return %c0_i32, %c0_i32_0 : i32, i32
  }
  func.func @transform_7(%arg0: i32) -> (i32, i32) {
    %c0_i32 = arith.constant 0 : i32
    %c0_i32_0 = arith.constant 0 : i32
    return %arg0, %c0_i32 : i32, i32
  }
}

</mosaic_0001>

<bundles_post_ra>
// kernel: tpu_custom_call.1
= control target key start
LH: loop header
LB: loop body
LE: loop exit
PB: predicated region body
PF: predicated region fallthrough
CT: control target
= control target key end

     0   :  { %12 = vsyncpa [#allocation3], 0  ;;  %s565_s0 = inlined_call_operand.vmem [shape: f32[24,64], index: 0, kind: input, shape index: {}]   ;;  %s566_s1 = inlined_call_operand.vmem [shape: bf16[64,32], index: 1, kind: input, shape index: {}]   ;;  %s567_s2 = inlined_call_operand.vmem [shape: f32[1,32], index: 2, kind: input, shape index: {}]   ;;  %s568_s3 = inlined_call_operand.vmem [shape: bf16[32,32], index: 3, kind: input, shape index: {}]   ;;  %s569_s4 = inlined_call_operand.hbm [shape: f32[1,32], index: 4, kind: input, shape index: {}]   ;;  %s570_s5 = inlined_call_operand.vmem [shape: bf16[32,32], index: 5, kind: input, shape index: {}]   ;;  %s571_s6 = inlined_call_operand.vmem [shape: f32[1,32], index: 6, kind: input, shape index: {}]   ;;  %s572_s7 = inlined_call_operand.hbm [shape: f32[24,32], index: 7, kind: output, shape index: {}]  }
   0x1   :  { %13 = vsyncpa [#allocation4], 0  ;;  %s466_s24 = smov [#allocation2]  }
   0x2   :  { %s28_s25 = sshll.u32 %s466_s24, 4  ;;  %s29_s25 = int_to_ptr.vmem [resolvable:$true] %s28_s25 }
   0x3   :  { %s430_s26 = scalar_lea.vmem %s29_s25, 16  ;;  %s434_s27 = scalar_lea.vmem %s29_s25, 32 }
   0x4   :  { %p431_p0 = scmp.ne.s32.totalorder %s29_s25, %s430_s26  ;;  %p435_p1 = scmp.lt.s32.totalorder %s29_s25, %s29_s25 }
   0x5   :  { %p436_p2 = scmp.lt.s32.totalorder %s434_s27, %s430_s26 }
   0x7   :  { %p437_p3 = por %p436_p2, %p435_p1 }
   0x9   :  { %p438_p4 = pnand %p437_p3, %p431_p0 }
   0xb   :  { %441 = shalt.err (!%p438_p4)
}
   0xc   :  { %31 = dma.hbm_to_vmem [thread:$0]  %s569_s4, 16, %s29_s25, [#allocation3]  }
   0xd   :  { %462 = dma.done.wait [#allocation3], 16  }
   0xe   :  { %463 = vsyncadd [#allocation3], 4294967280  ;;  %v408_v0 = vld [vmem:[%s566_s1 + $0x18] sm:$0xff]   ;;  %v409_v1 = vld [vmem:[%s566_s1 + $0x10] sm:$0xff]   ;;  %vm84_vm0 = vcmask 523264   ;;  %vm167_vm1 = vcmask 261120  }
   0xf   :  { %376 = vmatprep.subr.bf16.mxu0 %v408_v0  ;;  %v410_v2 = vld [vmem:[%s566_s1 + $0x8] sm:$0xff]   ;;  %v40_v3 = vld [vmem:[%s565_s0] sm:$0xff]  ;;  %v42_v7 = vld [vmem:[%s565_s0 + $0x10] sm:$0xff] }
  0x10   :  { %377 = vmatpush3.bf16.msra.mxu0 %v408_v0  ;;  %v41_v4 = vld [vmem:[%s565_s0 + $0x8] sm:$0xff]  ;;  %v411_v6 = vld [vmem:[%s566_s1] sm:$0xff]   ;;  %v44_v8 = vpack.c.bf16 %v42_v7, %v42_v7 }
  0x11   :  { %378 = vmatprep.subr.bf16.mxu0 %v409_v1  ;;  %v43_v5 = vpack.c.bf16 %v41_v4, %v40_v3  ;;  %v412_v9 = vld [vmem:[%s568_s3 + $0x8] sm:$0xff]   ;;  %v413_v10 = vld [vmem:[%s568_s3] sm:$0xff]  }
  0x12   :  { %388 = vmatprep.subr.bf16.mxu1 %v412_v9  ;;  %v345_v12 = vld [vmem:[%s567_s2] ss:$0 sm:$0xff]  ;;  %v414_v24 = vld [vmem:[%s570_s5 + $0x8] sm:$0xff]  }
  0x13   :  { %384 = vmatprep.mubr.msk.bf16.mxu0 %vm84_vm0, %v43_v5  ;;  %389 = vmatpush3.bf16.msra.mxu1 %v412_v9  ;;  %v415_v25 = vld [vmem:[%s570_s5] sm:$0xff]  }
  0x14   :  { %379 = vmatpush3.bf16.msra.mxu0 %v409_v1  ;;  %390 = vmatprep.subr.bf16.mxu1 %v413_v10  ;;  %v352_v27 = vld [vmem:[#allocation2] ss:$0 sm:$0xff] }
  0x15   :  { %380 = vmatprep.subr.bf16.mxu0 %v410_v2  ;;  %v357_v39 = vld [vmem:[%s571_s6] ss:$0 sm:$0xff]  ;;  %s467_s6 = smov [#allocation5]  }
  0x16   :  { %s333_s27 = sshll.u32 %s467_s6, 4  ;;  %s334_s27 = int_to_ptr.vmem [resolvable:$true] %s333_s27 }
  0x17   :  { %391 = vmatpush3.bf16.msra.mxu1 %v413_v10  ;;  %s442_s28 = scalar_lea.vmem %s334_s27, 384  ;;  %p447_p6 = scmp.lt.s32.totalorder %s334_s27, %s334_s27 }
  0x18   :  { %381 = vmatpush3.bf16.msra.mxu0 %v410_v2  ;;  %396 = vmatprep.subr.bf16.mxu1 %v414_v24  ;;  %p443_p5 = scmp.ne.s32.totalorder %s334_s27, %s442_s28  ;;  %p448_p7 = scmp.lt.s32.totalorder %s442_s28, %s442_s28 }
  0x19   :  { %382 = vmatprep.subr.bf16.mxu0 %v411_v6 }
  0x1a   :  { %p449_p8 = por %p448_p7, %p447_p6 }
  0x1c   :  { %383 = vmatpush3.bf16.msra.mxu0 %v411_v6  ;;  %p450_p9 = pnand %p449_p8, %p443_p5 }
  0x1f   :  { %385 = vmatmul.mubr.msk.bf16.vlgmr.msra.gmra.mxu0 %vm84_vm0, %v44_v8 }
  0xdf   :  { %v386_v11 = vpop.f32.mrf.mxu0 }
  0xe0   :  { %v134_v14 = vadd.f32 %v386_v11, %v345_v12 }
  0xe1   :  { %v125_v13 = vpop.f32.mrf.mxu0 }
  0xe2   :  { %v126_v16 = vadd.f32 %v345_v12, %v125_v13  ;;  %v141_v19 = vmax.f32 %v134_v14, 0.0 }
  0xe3   :  { %v387_v15 = vpop.f32.mrf.mxu0 }
  0xe4   :  { %v139_v20 = vmax.f32 %v126_v16, 0.0  ;;  %v143_v23 = vpack.c.bf16 %v141_v19, %v141_v19 }
  0xe5   :  { %v128_v17 = vpop.f32.mrf.mxu0 }
  0xe6   :  { %v129_v18 = vadd.f32 %v345_v12, %v128_v17 }
  0xe8   :  { %v140_v21 = vmax.f32 %v129_v18, 0.0 }
  0xea   :  { %v142_v22 = vpack.c.bf16 %v140_v21, %v139_v20 }
  0xec   :  { %392 = vmatprep.mubr.msk.bf16.mxu1 %vm167_vm1, %v142_v22 }
  0xed   :  { %393 = vmatmul.mubr.msk.bf16.vlgmr.msra.gmra.mxu1 %vm167_vm1, %v143_v23 }
  0xee   :  { %397 = vmatpush3.bf16.msra.mxu1 %v414_v24 }
  0xef   :  { %398 = vmatprep.subr.bf16.mxu1 %v415_v25 }
  0xf2   :  { %399 = vmatpush3.bf16.msra.mxu1 %v415_v25 }
 0x1ad   :  { %v394_v26 = vpop.f32.mrf.mxu1 }
 0x1ae   :  { %v217_v29 = vadd.f32 %v394_v26, %v352_v27 }
 0x1af   :  { %v208_v28 = vpop.f32.mrf.mxu1 }
 0x1b0   :  { %v209_v31 = vadd.f32 %v352_v27, %v208_v28  ;;  %v224_v34 = vmax.f32 %v217_v29, 0.0 }
 0x1b1   :  { %v395_v30 = vpop.f32.mrf.mxu1 }
 0x1b2   :  { %v222_v35 = vmax.f32 %v209_v31, 0.0  ;;  %v226_v38 = vpack.c.bf16 %v224_v34, %v224_v34 }
 0x1b3   :  { %v211_v32 = vpop.f32.mrf.mxu1 }
 0x1b4   :  { %v212_v33 = vadd.f32 %v352_v27, %v211_v32 }
 0x1b6   :  { %v223_v36 = vmax.f32 %v212_v33, 0.0 }
 0x1b8   :  { %v225_v37 = vpack.c.bf16 %v223_v36, %v222_v35 }
 0x1ba   :  { %400 = vmatprep.mubr.msk.bf16.mxu1 %vm167_vm1, %v225_v37 }
 0x1bb   :  { %401 = vmatmul.mubr.msk.bf16.vlgmr.msra.gmra.mxu1 %vm167_vm1, %v226_v38 }
 0x27b   :  { %v402_v40 = vpop.f32.mrf.mxu1 }
 0x27c   :  { %v299_v41 = vadd.f32 %v402_v40, %v357_v39 }
 0x27d   :  { %v290_v42 = vpop.f32.mrf.mxu1 }
 0x27e   :  { %v291_v43 = vadd.f32 %v357_v39, %v290_v42  ;;  %v306_v44 = vmul.f32 %v299_v41, %v299_v41 }
 0x27f   :  { %v403_v45 = vpop.f32.mrf.mxu1 }
 0x280   :  { %v313_v46 = vsel %vm167_vm1, %v306_v44, 0.0  ;;  %v304_v47 = vmul.f32 %v291_v43, %v291_v43 }
 0x281   :  { %314 = vadd.xlane.f32.xlu1 %v313_v46  ;;  %v293_v48 = vpop.f32.mrf.mxu1 }
 0x282   :  { %v294_v49 = vadd.f32 %v357_v39, %v293_v48  ;;  %v307_v50 = vsel %vm167_vm1, %v304_v47, 0.0 }
 0x283   :  { %308 = vadd.xlane.f32.xlu0 %v307_v50 }
 0x284   :  { %v305_v51 = vmul.f32 %v294_v49, %v294_v49 }
 0x286   :  { %v310_v52 = vsel %vm167_vm1, %v305_v51, 0.0 }
 0x287   :  { %311 = vadd.xlane.f32.xlu0 %v310_v52 }
 0x30a   :  { %v315_v53 = vpop.xlane.xlu1 %314 }
 0x30b   :  { %v318_v54 = vadd.f32 1e-12, %v315_v53 }
 0x30c   :  { %v309_v55 = vpop.xlane.xlu0 %308 }
 0x30d   :  { %416 = vrsqrt.f32 %v318_v54  ;;  %v316_v56 = vadd.f32 1e-12, %v309_v55 }
 0x30f   :  { %418 = vrsqrt.f32 %v316_v56 }
 0x310   :  { %v312_v57 = vpop.xlane.xlu0 %311 }
 0x311   :  { %v317_v58 = vadd.f32 1e-12, %v312_v57 }
 0x313   :  { %420 = vrsqrt.f32 %v317_v58 }
 0x31a   :  { %v417_v59 = vpop.eup %416 }
 0x31b   :  { %v324_v60 = vmul.f32 %v417_v59, %v299_v41 }
 0x31c   :  { %v419_v61 = vpop.eup %418 }
 0x31d   :  { %327 = vst.msk [vmem:[#allocation5 + $0x10] sm:$0xff] %vm167_vm1, %v324_v60  ;;  %v322_v62 = vmul.f32 %v419_v61, %v291_v43 }
 0x31f   :  { %325 = vst.msk [vmem:[#allocation5] sm:$0xff] %vm167_vm1, %v322_v62 }
 0x320   :  { %v421_v63 = vpop.eup %420 }
 0x321   :  { %v323_v0 = vmul.f32 %v421_v63, %v294_v49 }
 0x323   :  { %326 = vst.msk [vmem:[#allocation5 + $0x8] sm:$0xff] %vm167_vm1, %v323_v0 }
 0x324   :  { %453 = shalt.err (!%p450_p9)
}
 0x325   :  { %s468_s29 = smov 128   ;;  %s469_s30 = smov 8  }
 0x326   :  { %339 = dma.vmem_to_hbm [thread:$0]  %s334_s27, 384, %s572_s7, [#allocation4], %s468_s29, %s468_s29, %s469_s30  }
 0x327   :  { %464 = dma.done.wait [#allocation4], 384  }
 0x328   :  { %465 = vsyncadd [#allocation4], 4294966912 }
 0x329   :  { %343 = vsyncpa [#allocation3], 1 }
 0x32a   :  { %344 = vsyncpa [#allocation4], 1 }

</bundles_post_ra>
